<compile_context>
chip_gen: v7x
topology: tpu7x:2x2x1
jax: 0.10.0
libtpu: 0.0.40
codegen_flags: <defaults>
</compile_context>

<pallas_src>
import functools

import jax
import jax.numpy as jnp
from jax import lax
from jax.experimental import pallas as pl
from jax.experimental.pallas import tpu as pltpu

MARGIN = 1.0
EPS = 1e-6  # matches torch.nn.functional.pairwise_distance default


def _triplet_kernel(a_ref, p_ref, n_ref, out_ref, *, n_rows, tile_rows, inv_n, margin):
    """One grid step: tile_rows rows of the batch; accumulate hinge sum into SMEM out."""
    i = pl.program_id(0)

    @pl.when(i == 0)
    def _init():
        out_ref[0, 0] = jnp.float32(0.0)

    # Upcast in-kernel (wrapper passes native dtype through untouched).
    a = a_ref[...].astype(jnp.float32)          # (tm, D)
    p = p_ref[...].astype(jnp.float32)
    n = n_ref[...].astype(jnp.float32)

    dap = a - p + EPS
    dan = a - n + EPS
    d_ap = jnp.sqrt(jnp.sum(dap * dap, axis=1, keepdims=True))   # (tm, 1)
    d_an = jnp.sqrt(jnp.sum(dan * dan, axis=1, keepdims=True))   # (tm, 1)

    hinge = jnp.maximum(d_ap - d_an + margin, 0.0)               # (tm, 1)

    # Mask rows past the true batch size (padded rows contribute 0).
    row = lax.broadcasted_iota(jnp.int32, (tile_rows, 1), 0) + i * tile_rows
    hinge = jnp.where(row < n_rows, hinge, 0.0)

    # Fold the 1/N of the mean into each partial so no finalize pass is needed.
    out_ref[0, 0] += jnp.sum(hinge) * inv_n


def triplet_loss_forward(anchor, positive, negative, margin=MARGIN, tile_rows=512):
    """Pallas implementation of TripletLoss(m=margin).forward(anchor, positive, negative)."""
    N, D = anchor.shape

    # Row tile: multiple of 8 (sublane), capped so the 3 double-buffered (tm, D) input
    # slabs stay far below VMEM limits on all of v5e / v6e / v7x.
    tm = min(int(tile_rows), ((N + 7) // 8) * 8)
    tm = ((tm + 7) // 8) * 8

    n_pad = ((N + tm - 1) // tm) * tm
    pad = n_pad - N
    if pad:
        anchor = jnp.pad(anchor, ((0, pad), (0, 0)))
        positive = jnp.pad(positive, ((0, pad), (0, 0)))
        negative = jnp.pad(negative, ((0, pad), (0, 0)))

    kernel = functools.partial(
        _triplet_kernel,
        n_rows=N,
        tile_rows=tm,
        inv_n=1.0 / N,
        margin=float(margin),
    )

    out = pl.pallas_call(
        kernel,
        out_shape=jax.ShapeDtypeStruct((1, 1), jnp.float32),
        grid=(n_pad // tm,),
        in_specs=[
            pl.BlockSpec((tm, D), lambda i: (i, 0)),
            pl.BlockSpec((tm, D), lambda i: (i, 0)),
            pl.BlockSpec((tm, D), lambda i: (i, 0)),
        ],
        # Scalar result: keep it in SMEM, accumulated across all grid steps.
        out_specs=pl.BlockSpec(memory_space=pltpu.MemorySpace.SMEM),
        compiler_params=pltpu.CompilerParams(
            # Grid axis is a reduction into the shared scalar accumulator.
            dimension_semantics=("arbitrary",),
        ),
    )(anchor, positive, negative)

    return out[0, 0]


def _reference(anchor, positive, negative, margin=MARGIN, eps=EPS):
    d_ap = jnp.sqrt(jnp.sum((anchor - positive + eps) ** 2, axis=1))
    d_an = jnp.sqrt(jnp.sum((anchor - negative + eps) ** 2, axis=1))
    return jnp.mean(jnp.maximum(d_ap - d_an + margin, 0.0))


if __name__ == "__main__":
    key = jax.random.PRNGKey(0)

    # Small shapes consistent with the module: (batch, embedding_dim) triplets.
    batch, dim = 8, 32
    ka, kp, kn = jax.random.split(key, 3)
    anchor = jax.random.normal(ka, (batch, dim), dtype=jnp.float32)
    positive = jax.random.normal(kp, (batch, dim), dtype=jnp.float32)
    negative = jax.random.normal(kn, (batch, dim), dtype=jnp.float32)

    loss = triplet_loss_forward(anchor, positive, negative)
    loss = jax.block_until_ready(loss)

    expected = _reference(anchor, positive, negative)
    assert loss.shape == ()
    assert jnp.allclose(loss, expected, rtol=1e-5, atol=1e-5), (
        f"mismatch: got {loss}, expected {expected}"
    )

    # Second check: ragged batch (exercises multi-step accumulation + row masking).
    batch2, dim2 = 100, 256
    kb = jax.random.split(key, 7)
    a2 = jax.random.normal(kb[4], (batch2, dim2), dtype=jnp.float32)
    p2 = jax.random.normal(kb[5], (batch2, dim2), dtype=jnp.float32)
    n2 = jax.random.normal(kb[6], (batch2, dim2), dtype=jnp.float32)
    loss2 = jax.block_until_ready(triplet_loss_forward(a2, p2, n2, tile_rows=64))
    expected2 = _reference(a2, p2, n2)
    assert jnp.allclose(loss2, expected2, rtol=1e-5, atol=1e-5), (
        f"mismatch (ragged): got {loss2}, expected {expected2}"
    )

    print("KERNEL_OK")
</pallas_src>

<mosaic_0001>
module attributes {stable_mosaic.version = 11 : i64} {
  func.func @_triplet_kernel(%arg0: i32, %arg1: memref<8x32xf32, #tpu.memory_space<vmem>>, %arg2: memref<8x32xf32, #tpu.memory_space<vmem>>, %arg3: memref<8x32xf32, #tpu.memory_space<vmem>>, %arg4: memref<1x1xf32, #tpu.memory_space<smem>>) attributes {dimension_semantics = [#tpu.dimension_semantics<arbitrary>], iteration_bounds = array<i64: 1>, scalar_prefetch = 0 : i64, scratch_operands = 0 : i64, tpu.core_type = #tpu.core_type<tc>, window_params = [{transform_indices = @transform_0, window_bounds = array<i64: 8, 32>}, {transform_indices = @transform_1, window_bounds = array<i64: 8, 32>}, {transform_indices = @transform_2, window_bounds = array<i64: 8, 32>}, {transform_indices = @transform_3, window_bounds = array<i64: 1, 1>}]} {
    %c0_i32 = arith.constant 0 : i32
    %0 = arith.cmpi eq, %arg0, %c0_i32 : i32
    %1 = arith.extui %0 : i1 to i32
    %c0_i32_0 = arith.constant 0 : i32
    %2 = arith.cmpi ne, %1, %c0_i32_0 : i32
    scf.if %2 {
      %cst_19 = arith.constant 0.000000e+00 : f32
      %c0_20 = arith.constant 0 : index
      %c0_21 = arith.constant 0 : index
      %41 = memref.load %arg4[%c0_20, %c0_21] : memref<1x1xf32, #tpu.memory_space<smem>>
      memref.store %cst_19, %arg4[%c0_20, %c0_21] : memref<1x1xf32, #tpu.memory_space<smem>>
    } else {
    }
    %c0 = arith.constant 0 : index
    %c0_1 = arith.constant 0 : index
    %3 = vector.load %arg1[%c0, %c0_1] : memref<8x32xf32, #tpu.memory_space<vmem>>, vector<8x32xf32>
    %c0_2 = arith.constant 0 : index
    %c0_3 = arith.constant 0 : index
    %4 = vector.load %arg2[%c0_2, %c0_3] : memref<8x32xf32, #tpu.memory_space<vmem>>, vector<8x32xf32>
    %c0_4 = arith.constant 0 : index
    %c0_5 = arith.constant 0 : index
    %5 = vector.load %arg3[%c0_4, %c0_5] : memref<8x32xf32, #tpu.memory_space<vmem>>, vector<8x32xf32>
    %6 = arith.subf %3, %4 : vector<8x32xf32>
    %cst = arith.constant 9.99999997E-7 : f32
    %7 = vector.broadcast %cst : f32 to vector<8x32xf32>
    %8 = arith.addf %6, %7 : vector<8x32xf32>
    %9 = arith.subf %3, %5 : vector<8x32xf32>
    %cst_6 = arith.constant 9.99999997E-7 : f32
    %10 = vector.broadcast %cst_6 : f32 to vector<8x32xf32>
    %11 = arith.addf %9, %10 : vector<8x32xf32>
    %12 = arith.mulf %8, %8 : vector<8x32xf32>
    %cst_7 = arith.constant dense<0.000000e+00> : vector<8xf32>
    %13 = vector.multi_reduction <add>, %12, %cst_7 [1] : vector<8x32xf32> to vector<8xf32>
    %14 = vector.shape_cast %13 : vector<8xf32> to vector<8x1xf32>
    %15 = math.sqrt %14 : vector<8x1xf32>
    %16 = arith.mulf %11, %11 : vector<8x32xf32>
    %cst_8 = arith.constant dense<0.000000e+00> : vector<8xf32>
    %17 = vector.multi_reduction <add>, %16, %cst_8 [1] : vector<8x32xf32> to vector<8xf32>
    %18 = vector.shape_cast %17 : vector<8xf32> to vector<8x1xf32>
    %19 = math.sqrt %18 : vector<8x1xf32>
    %20 = arith.subf %15, %19 : vector<8x1xf32>
    %cst_9 = arith.constant 1.000000e+00 : f32
    %21 = vector.broadcast %cst_9 : f32 to vector<8x1xf32>
    %22 = arith.addf %20, %21 : vector<8x1xf32>
    %cst_10 = arith.constant 0.000000e+00 : f32
    %23 = vector.broadcast %cst_10 : f32 to vector<8x1xf32>
    %24 = arith.maximumf %22, %23 : vector<8x1xf32>
    %25 = tpu.iota {dimensions = array<i32: 0>} : vector<8x1xi32>
    %c8_i32 = arith.constant 8 : i32
    %26 = arith.muli %arg0, %c8_i32 : i32
    %27 = vector.broadcast %26 : i32 to vector<8x1xi32>
    %28 = arith.addi %25, %27 : vector<8x1xi32>
    %c8_i32_11 = arith.constant 8 : i32
    %29 = vector.broadcast %c8_i32_11 : i32 to vector<8x1xi32>
    %30 = arith.cmpi slt, %28, %29 : vector<8x1xi32>
    %cst_12 = arith.constant 0.000000e+00 : f32
    %31 = vector.broadcast %cst_12 : f32 to vector<8x1xf32>
    %32 = arith.select %30, %24, %31 : vector<8x1xi1>, vector<8x1xf32>
    %c0_13 = arith.constant 0 : index
    %c0_14 = arith.constant 0 : index
    %33 = memref.load %arg4[%c0_13, %c0_14] : memref<1x1xf32, #tpu.memory_space<smem>>
    %34 = vector.shape_cast %32 : vector<8x1xf32> to vector<1x8x1xf32>
    %cst_15 = arith.constant dense<0.000000e+00> : vector<1xf32>
    %35 = vector.multi_reduction <add>, %34, %cst_15 [1, 2] : vector<1x8x1xf32> to vector<1xf32>
    %36 = vector.shape_cast %35 : vector<1xf32> to vector<1x1x1xf32>
    %37 = vector.extract %36[0, 0, 0] : f32 from vector<1x1x1xf32>
    %cst_16 = arith.constant 1.250000e-01 : f32
    %38 = arith.mulf %37, %cst_16 : f32
    %39 = arith.addf %33, %38 : f32
    %c0_17 = arith.constant 0 : index
    %c0_18 = arith.constant 0 : index
    %40 = memref.load %arg4[%c0_17, %c0_18] : memref<1x1xf32, #tpu.memory_space<smem>>
    memref.store %39, %arg4[%c0_17, %c0_18] : memref<1x1xf32, #tpu.memory_space<smem>>
    return
  }
  func.func @transform_0(%arg0: i32) -> (i32, i32) {
    %c0_i32 = arith.constant 0 : i32
    %c0_i32_0 = arith.constant 0 : i32
    return %arg0, %c0_i32 : i32, i32
  }
  func.func @transform_1(%arg0: i32) -> (i32, i32) {
    %c0_i32 = arith.constant 0 : i32
    %c0_i32_0 = arith.constant 0 : i32
    return %arg0, %c0_i32 : i32, i32
  }
  func.func @transform_2(%arg0: i32) -> (i32, i32) {
    %c0_i32 = arith.constant 0 : i32
    %c0_i32_0 = arith.constant 0 : i32
    return %arg0, %c0_i32 : i32, i32
  }
  func.func @transform_3(%arg0: i32) -> (i32, i32) {
    %c0_i32 = arith.constant 0 : i32
    %c0_i32_0 = arith.constant 0 : i32
    %c0_i32_1 = arith.constant 0 : i32
    return %c0_i32, %c0_i32_0 : i32, i32
  }
}

</mosaic_0001>

<bundles_post_ra>
// kernel: tpu_custom_call.1
= control target key start
LH: loop header
LB: loop body
LE: loop exit
PB: predicated region body
PF: predicated region fallthrough
CT: control target
= control target key end

     0   :  { %8 = vsyncpa [#allocation3], 0  ;;  %s292_s0 = inlined_call_operand.hbm [shape: f32[8,32], index: 0, kind: input, shape index: {}]   ;;  %s293_s1 = inlined_call_operand.hbm [shape: f32[8,32], index: 1, kind: input, shape index: {}]   ;;  %s294_s2 = inlined_call_operand.hbm [shape: f32[8,32], index: 2, kind: input, shape index: {}]   ;;  %s295_s3 = inlined_call_operand.hbm [shape: f32[1,1], index: 3, kind: output, shape index: {}]  }
   0x1   :  { %9 = vsyncpa [#allocation6], 0 }
   0x2   :  { %10 = vsyncpa [#allocation4], 0  ;;  %s220_s12 = smov [#allocation5]   ;;  %s221_s14 = smov [#allocation2]  }
   0x3   :  { %s27_s13 = sshll.u32 %s220_s12, 4  ;;  %s17_s15 = sshll.u32 %s221_s14, 4  ;;  %s28_s13 = int_to_ptr.vmem [resolvable:$true] %s27_s13  ;;  %s18_s15 = int_to_ptr.vmem [resolvable:$true] %s17_s15 }
   0x4   :  { %s138_s18 = scalar_lea.hbm %s293_s1, 128 }
   0x5   :  { %p139_p0 = scmp.ne.s32.totalorder %s293_s1, %s138_s18  ;;  %p142_p1 = scmp.lt.u32.totalorder %s138_s18, %s293_s1 }
   0x7   :  { %p144_p2 = pnand %p142_p1, %p139_p0 }
   0x9   :  { %147 = shalt.err (!%p144_p2)
}
   0xa   :  { %s148_s23 = scalar_lea.vmem %s28_s13, 128  ;;  %p153_p4 = scmp.lt.s32.totalorder %s28_s13, %s28_s13 }
   0xb   :  { %p149_p3 = scmp.ne.s32.totalorder %s28_s13, %s148_s23  ;;  %p154_p5 = scmp.lt.s32.totalorder %s148_s23, %s148_s23 }
   0xd   :  { %p155_p6 = por %p154_p5, %p153_p4 }
   0xf   :  { %p156_p7 = pnand %p155_p6, %p149_p3 }
  0x11   :  { %159 = shalt.err (!%p156_p7)
}
  0x12   :  { %30 = dma.hbm_to_vmem [thread:$0]  %s293_s1, 128, %s28_s13, [#allocation6]  }
  0x13   :  { %s160_s28 = scalar_lea.hbm %s292_s0, 128 }
  0x14   :  { %p161_p8 = scmp.ne.s32.totalorder %s292_s0, %s160_s28  ;;  %p164_p9 = scmp.lt.u32.totalorder %s160_s28, %s292_s0 }
  0x16   :  { %p166_p10 = pnand %p164_p9, %p161_p8 }
  0x18   :  { %169 = shalt.err (!%p166_p10)
}
  0x19   :  { %s170_s6 = scalar_lea.vmem %s18_s15, 128  ;;  %p175_p12 = scmp.lt.s32.totalorder %s18_s15, %s18_s15 }
  0x1a   :  { %p171_p11 = scmp.ne.s32.totalorder %s18_s15, %s170_s6  ;;  %p176_p13 = scmp.lt.s32.totalorder %s170_s6, %s170_s6 }
  0x1c   :  { %p177_p0 = por %p176_p13, %p175_p12 }
  0x1e   :  { %p178_p1 = pnand %p177_p0, %p171_p11 }
  0x20   :  { %181 = shalt.err (!%p178_p1)
}
  0x21   :  { %20 = dma.hbm_to_vmem [thread:$0]  %s292_s0, 128, %s18_s15, [#allocation3]  }
  0x22   :  { %s222_s8 = smov [#allocation7]   ;;  %s182_s12 = scalar_lea.hbm %s294_s2, 128 }
  0x23   :  { %s37_s9 = sshll.u32 %s222_s8, 4  ;;  %p183_p2 = scmp.ne.s32.totalorder %s294_s2, %s182_s12  ;;  %s38_s9 = int_to_ptr.vmem [resolvable:$true] %s37_s9 }
  0x24   :  { %p186_p3 = scmp.lt.u32.totalorder %s182_s12, %s294_s2 }
  0x26   :  { %p188_p4 = pnand %p186_p3, %p183_p2 }
  0x28   :  { %191 = shalt.err (!%p188_p4)
}
  0x29   :  { %s192_s18 = scalar_lea.vmem %s38_s9, 128  ;;  %p197_p6 = scmp.lt.s32.totalorder %s38_s9, %s38_s9 }
  0x2a   :  { %p193_p5 = scmp.ne.s32.totalorder %s38_s9, %s192_s18  ;;  %p198_p7 = scmp.lt.s32.totalorder %s192_s18, %s192_s18 }
  0x2c   :  { %p199_p8 = por %p198_p7, %p197_p6 }
  0x2e   :  { %p200_p9 = pnand %p199_p8, %p193_p5 }
  0x30   :  { %203 = shalt.err (!%p200_p9)
}
  0x31   :  { %40 = dma.hbm_to_vmem [thread:$0]  %s294_s2, 128, %s38_s9, [#allocation6]  }
  0x32   :  { %214 = dma.done.wait [#allocation3], 128  }
  0x33   :  { %215 = vsyncadd [#allocation3], 4294967168 }
  0x34   :  { %216 = dma.done.wait [#allocation6], 256  }
  0x35   :  { %217 = vsyncadd [#allocation6], 4294967040  ;;  %v56_v0 = vld [vmem:[#allocation2] sm:$0xff]  ;;  %v57_v1 = vld [vmem:[#allocation5] sm:$0xff]  ;;  %vm64_vm0 = vcmask 261120   ;;  %vm97_vm5 = vcmask 7168  }
  0x36   :  { %v58_v2 = vld [vmem:[#allocation7] sm:$0xff]  ;;  %v59_v3 = vsub.f32 %v56_v0, %v57_v1  ;;  %s204_s22 = scalar_lea.hbm %s295_s3, 16 }
  0x37   :  { %v61_v4 = vsub.f32 %v56_v0, %v58_v2  ;;  %p205_p10 = scmp.ne.s32.totalorder %s295_s3, %s204_s22  ;;  %p208_p11 = scmp.lt.u32.totalorder %s204_s22, %s295_s3 }
  0x38   :  { %v60_v5 = vadd.f32 1e-06, %v59_v3 }
  0x39   :  { %v62_v6 = vadd.f32 1e-06, %v61_v4  ;;  %p210_p12 = pnand %p208_p11, %p205_p10 }
  0x3a   :  { %v63_v7 = vmul.f32 %v60_v5, %v60_v5 }
  0x3b   :  { %v75_v8 = vmul.f32 %v62_v6, %v62_v6 }
  0x3c   :  { %v65_v9 = vsel %vm64_vm0, %v63_v7, 0.0 }
  0x3d   :  { %66 = vadd.xlane.f32.xlu0 %v65_v9  ;;  %v76_v10 = vsel %vm64_vm0, %v75_v8, 0.0 }
  0x41   :  { %77 = vadd.xlane.f32.xlu0 %v76_v10 }
  0xca   :  { %v67_v11 = vpop.xlane.xlu0 %66 }
  0xcb   :  { %134 = vrsqrt.f32 %v67_v11  ;;  %vm70_vm1 = vcmp.eq.f32.partialorder %v67_v11, inf  ;;  %v73_v18 = vand.u32 2147483648, %v67_v11  ;;  %vm72_vm3 = vcmp.eq.f32.partialorder %v67_v11, 0.0 }
  0xce   :  { %v78_v12 = vpop.xlane.xlu0 %77 }
  0xcf   :  { %136 = vrsqrt.f32 %v78_v12  ;;  %vm81_vm2 = vcmp.eq.f32.partialorder %v78_v12, inf  ;;  %v84_v19 = vand.u32 2147483648, %v78_v12  ;;  %vm83_vm4 = vcmp.eq.f32.partialorder %v78_v12, 0.0 }
  0xd5   :  { %v135_v13 = vpop.eup %134 }
  0xd6   :  { %v69_v14 = vmul.f32 %v135_v13, %v67_v11 }
  0xd8   :  { %v71_v17 = vsel %vm70_vm1, %v67_v11, %v69_v14 }
  0xd9   :  { %v137_v15 = vpop.eup %136  ;;  %v74_v21 = vsel %vm72_vm3, %v73_v18, %v71_v17 }
  0xda   :  { %v80_v16 = vmul.f32 %v137_v15, %v78_v12 }
  0xdc   :  { %v82_v20 = vsel %vm81_vm2, %v78_v12, %v80_v16 }
  0xdd   :  { %v85_v22 = vsel %vm83_vm4, %v84_v19, %v82_v20 }
  0xde   :  { %v86_v23 = vsub.f32 %v74_v21, %v85_v22 }
  0xe0   :  { %v87_v24 = vadd.f32 1.0, %v86_v23 }
  0xe2   :  { %v88_v25 = vmax.f32 %v87_v24, 0.0 }
  0xe4   :  { %v98_v26 = vsel %vm97_vm5, %v88_v25, 0.0 }
  0xe5   :  { %99 = vadd.xlane.f32.xlu1 %v98_v26 }
 0x172   :  { %v100_v27 = vpop.xlane.xlu1 %99 }
 0x173   :  { %v101_v28 = vrot.slane %v100_v27, 4 }
 0x175   :  { %v102_v29 = vadd.f32 %v101_v28, %v100_v27 }
 0x177   :  { %v103_v30 = vrot.slane %v102_v29, 2 }
 0x179   :  { %v104_v31 = vadd.f32 %v103_v30, %v102_v29 }
 0x17b   :  { %v105_v32 = vrot.slane %v104_v31, 1 }
 0x17d   :  { %v106_v33 = vadd.f32 %v105_v32, %v104_v31 }
 0x17f   :  { %127 = vpush %v106_v33 }
 0x1b0   :  { %s128_s2 = spop %127 }
 0x1b1   :  { %s108_s19 = smul.f32 0.125, %s128_s2 }
 0x1b3   :  { %111 = sst [smem:[#allocation8]] %s108_s19 }
 0x1b4   :  { %213 = shalt.err (!%p210_p12)
}
 0x1b5   :  { %s223_s27 = smov [#allocation8]  }
 0x1b6   :  { %119 = dma.smem_to_hbm %s223_s27, 16, %s295_s3, [#allocation4]  }
 0x1b7   :  { %218 = dma.done.wait [#allocation4], 16  }
 0x1b8   :  { %219 = vsyncadd [#allocation4], 4294967280 }
 0x1b9   :  { %123 = sfence }
 0x1ba   :  { %124 = vsyncpa [#allocation3], 1 }
 0x1bb   :  { %125 = vsyncpa [#allocation6], 1 }
 0x1bc   :  { %126 = vsyncpa [#allocation4], 1 }

</bundles_post_ra>
